<compile_context>
chip_gen: v7x
topology: tpu7x:2x2x1
jax: 0.10.0
libtpu: 0.0.40
codegen_flags: <defaults>
</compile_context>

<pallas_src>
import jax
import jax.numpy as jnp
from jax.experimental import pallas as pl
from jax.experimental.pallas import tpu as pltpu


def encoder_kernel(x_ref, w_ref, b_ref, y_ref, y_norm_ref):
    # x_ref:      (tile_m, D_in)   -- streamed per grid step
    # w_ref:      (D_in, D_out)    -- resident (constant index_map)
    # b_ref:      (1, D_out)       -- resident
    # y_ref:      (tile_m, D_out)
    # y_norm_ref: (tile_m, D_out)
    x = x_ref[...]
    w = w_ref[...]
    b = b_ref[...]

    # Linear layer: MXU matmul with f32 accumulation, lane-broadcast bias.
    y = jnp.dot(x, w, preferred_element_type=jnp.float32) + b

    # Row-wise L2 norm (PyTorch dim=1, keepdim=True): per-row EUP reciprocal
    # (O(tile_m) transcendentals) + broadcast multiply.  approx=False keeps
    # the exact 1/(1e-6 + ||y||) epsilon semantics of the reference module.
    sq_sum = jnp.sum(y * y, axis=1, keepdims=True)
    inv = pl.reciprocal(1e-6 + jnp.sqrt(sq_sum), approx=False)

    # Two direct lane-dense stores (no packed slab, no wrapper unpack).
    y_ref[...] = y.astype(y_ref.dtype)
    y_norm_ref[...] = (y * inv).astype(y_norm_ref.dtype)


def _round_up(v, m):
    return ((v + m - 1) // m) * m


def _vmem_limit_bytes():
    """Generation-aware VMEM limit: ~48 MiB on v7x (64 MiB physical),
    ~112 MiB on v5e/v6e (128 MiB physical)."""
    cap = 64 * 1024 * 1024  # conservative default = v7x per-core VMEM
    try:
        cap = int(getattr(pltpu.get_tpu_info(), "vmem_capacity_bytes", cap))
    except Exception:
        pass
    # Leave ~16 MiB headroom for Mosaic internal scratch.
    return max(cap - 16 * 1024 * 1024, 32 * 1024 * 1024)


def _choose_tile_m(batch, d_in, d_out, x_bytes, out_bytes, *, align,
                   vmem_budget_bytes, target_step_bytes=3 * 1024 * 1024,
                   max_tile_m=4096, min_grid_steps=4):
    """M-tile sized by a streamed-bytes-per-step target (~3 MiB), the VMEM
    budget, and a minimum grid size (>= 2 steps per TensorCore on v7x
    whenever the batch allows)."""
    # HBM bytes streamed per batch row per step: x row in, y + y_norm rows out.
    per_row_stream = d_in * x_bytes + 2 * d_out * out_bytes
    # VMEM per batch row: streamed tiles are double-buffered by the pipeline.
    per_row_vmem = 2 * per_row_stream
    # Resident f32 weight + bias; budgeted as double-buffered in case the
    # single-buffer (pl.Buffered(1)) request is not honoured by this version.
    resident_bytes = 2 * (d_in * d_out + d_out) * 4
    if vmem_budget_bytes - resident_bytes < per_row_vmem * align:
        # TODO(synk): K-/N-tile the weight with an f32 accumulator when
        # D_in*D_out*4 approaches the VMEM limit; not needed at these dims.
        raise ValueError("weight too large for a fully-resident single block")

    rows_target = max(target_step_bytes // max(per_row_stream, 1), align)
    rows_fit = max((vmem_budget_bytes - resident_bytes) // per_row_vmem, align)
    # Keep at least `min_grid_steps` grid steps when the batch allows it.
    rows_for_grid = max(-(-batch // min_grid_steps), align)
    tile_m = min(rows_target, rows_fit, max_tile_m, rows_for_grid,
                 _round_up(batch, align))
    return max((tile_m // align) * align, align)


def encoder_forward(x, w_t, b, *, tile_m=None, out_dtype=None):
    """x: (B, D_in); w_t: (D_in, D_out) = PyTorch weight.T; b: (D_out,).

    Returns (y, y_norm), each (B, D_out).  out_dtype defaults to x.dtype;
    bf16 I/O halves HBM traffic on this bandwidth-bound kernel while keeping
    the matmul accumulate and the norm math in f32.
    """
    B, D_in = x.shape
    D_out = w_t.shape[1]
    assert w_t.shape == (D_in, D_out)
    assert b.shape == (D_out,)
    if out_dtype is None:
        out_dtype = x.dtype

    # bf16 tiles need (16, 128) granularity on the sublane axis.
    align = 16 if (x.dtype == jnp.bfloat16 or
                   jnp.dtype(out_dtype) == jnp.bfloat16) else 8
    vmem_limit = _vmem_limit_bytes()
    if tile_m is None:
        tile_m = _choose_tile_m(
            B, D_in, D_out,
            jnp.dtype(x.dtype).itemsize, jnp.dtype(out_dtype).itemsize,
            align=align,
            vmem_budget_bytes=vmem_limit - 4 * 1024 * 1024)
    assert tile_m > 0 and tile_m % align == 0, (
        f"tile_m must be a positive multiple of {align}")

    w_t = w_t.astype(jnp.float32)
    b2d = b.reshape(1, D_out).astype(jnp.float32)
    # Ragged final block (B % tile_m != 0) is masked by the pipeline; no
    # host-side padding pass over x.
    grid = (pl.cdiv(B, tile_m),)
    out_shape = (jax.ShapeDtypeStruct((B, D_out), out_dtype),
                 jax.ShapeDtypeStruct((B, D_out), out_dtype))

    def call(single_buffer_resident):
        resident_mode = (
            {"pipeline_mode": pl.Buffered(1)} if single_buffer_resident else {})
        in_specs = [
            pl.BlockSpec((tile_m, D_in), lambda i: (i, 0)),
            # Weight / bias are resident across the grid (constant block
            # index); single-buffering halves their VMEM reservation.
            pl.BlockSpec((D_in, D_out), lambda i: (0, 0), **resident_mode),
            pl.BlockSpec((1, D_out), lambda i: (0, 0), **resident_mode),
        ]
        out_specs = [
            pl.BlockSpec((tile_m, D_out), lambda i: (i, 0)),
            pl.BlockSpec((tile_m, D_out), lambda i: (i, 0)),
        ]
        return pl.pallas_call(
            encoder_kernel,
            out_shape=out_shape,
            grid_spec=pltpu.PrefetchScalarGridSpec(
                num_scalar_prefetch=0,
                grid=grid,
                in_specs=in_specs,
                out_specs=out_specs,
            ),
            compiler_params=pltpu.CompilerParams(
                # Multi-step parallel grid -> megacore sharding on v7x and
                # pipelined DMA/compute overlap on all generations.
                dimension_semantics=("parallel",),
                vmem_limit_bytes=vmem_limit,
            ),
        )(x, w_t, b2d)

    try:
        return call(single_buffer_resident=True)
    except Exception:
        # pl.Buffered(1) / pipeline_mode not supported on this jax version:
        # fall back to the default double-buffered resident weight.
        return call(single_buffer_resident=False)


if __name__ == "__main__":
    # Small shapes consistent with the module (const.input_dims / output_dims).
    batch = 20          # deliberately not a tile multiple: exercises ragged tail
    input_dims = 32
    output_dims = 64

    key = jax.random.PRNGKey(0)
    kx, kw, kb = jax.random.split(key, 3)

    # Deterministic "Linear" parameter init (uniform like PyTorch default).
    bound = 1.0 / jnp.sqrt(jnp.float32(input_dims))
    weight = jax.random.uniform(
        kw, (output_dims, input_dims), jnp.float32, -bound, bound
    )  # PyTorch layout (out, in)
    bias = jax.random.uniform(kb, (output_dims,), jnp.float32, -bound, bound)
    x = jax.random.normal(kx, (batch, input_dims), jnp.float32)

    # ---- f32 path (auto tile_m -> 8-row tiles, 3-step pipelined grid) ----
    y, y_norm = encoder_forward(x, weight.T, bias)
    y, y_norm = jax.block_until_ready((y, y_norm))

    y_ref = x @ weight.T + bias
    norm_ref = jnp.sqrt(jnp.sum(y_ref * y_ref, axis=1, keepdims=True))
    y_norm_ref = y_ref / (1e-6 + norm_ref)

    assert y.shape == (batch, output_dims) and y_norm.shape == (batch, output_dims)
    assert jnp.allclose(y, y_ref, atol=1e-5, rtol=1e-5)
    assert jnp.allclose(y_norm, y_norm_ref, atol=1e-5, rtol=1e-5)

    # ---- bf16 I/O path (halved HBM traffic; f32 matmul/norm math inside) ----
    x_bf16 = x.astype(jnp.bfloat16)
    yb, ybn = encoder_forward(x_bf16, weight.T, bias)
    yb, ybn = jax.block_until_ready((yb, ybn))

    xr = x_bf16.astype(jnp.float32)
    yr = xr @ weight.T + bias
    nr = jnp.sqrt(jnp.sum(yr * yr, axis=1, keepdims=True))
    ynr = yr / (1e-6 + nr)

    assert yb.dtype == jnp.bfloat16 and ybn.dtype == jnp.bfloat16
    assert jnp.allclose(yb.astype(jnp.float32), yr, atol=5e-2, rtol=5e-2)
    assert jnp.allclose(ybn.astype(jnp.float32), ynr, atol=5e-2, rtol=5e-2)

    print("KERNEL_OK")
</pallas_src>

<mosaic_0001>
module attributes {stable_mosaic.version = 11 : i64} {
  func.func @encoder_kernel(%arg0: i32, %arg1: memref<8x32xf32, #tpu.memory_space<vmem>>, %arg2: memref<32x64xf32, #tpu.memory_space<vmem>>, %arg3: memref<1x64xf32, #tpu.memory_space<vmem>>, %arg4: memref<8x64xf32, #tpu.memory_space<vmem>>, %arg5: memref<8x64xf32, #tpu.memory_space<vmem>>) attributes {dimension_semantics = [#tpu.dimension_semantics<parallel>], iteration_bounds = array<i64: 3>, scalar_prefetch = 0 : i64, scratch_operands = 0 : i64, tpu.core_type = #tpu.core_type<tc>, window_params = [{transform_indices = @transform_0, window_bounds = array<i64: 8, 32>}, {pipeline_mode = #tpu.pipeline_mode<synchronous>, transform_indices = @transform_1, window_bounds = array<i64: 32, 64>}, {pipeline_mode = #tpu.pipeline_mode<synchronous>, transform_indices = @transform_2, window_bounds = array<i64: 1, 64>}, {transform_indices = @transform_3, window_bounds = array<i64: 8, 64>}, {transform_indices = @transform_4, window_bounds = array<i64: 8, 64>}]} {
    %c0 = arith.constant 0 : index
    %c0_0 = arith.constant 0 : index
    %0 = vector.load %arg1[%c0, %c0_0] : memref<8x32xf32, #tpu.memory_space<vmem>>, vector<8x32xf32>
    %c0_1 = arith.constant 0 : index
    %c0_2 = arith.constant 0 : index
    %1 = vector.load %arg2[%c0_1, %c0_2] : memref<32x64xf32, #tpu.memory_space<vmem>>, vector<32x64xf32>
    %c0_3 = arith.constant 0 : index
    %c0_4 = arith.constant 0 : index
    %2 = vector.load %arg3[%c0_3, %c0_4] : memref<1x64xf32, #tpu.memory_space<vmem>>, vector<1x64xf32>
    %cst = arith.constant dense<0.000000e+00> : vector<8x64xf32>
    %3 = tpu.matmul %0, %1, %cst {dimension_numbers = #tpu.dot_dimension_numbers<[1], [0], [0], [1], [0, 0, 1, 1], [], []>} : vector<8x32xf32>, vector<32x64xf32>, vector<8x64xf32> -> vector<8x64xf32>
    %4 = vector.broadcast %2 : vector<1x64xf32> to vector<8x64xf32>
    %5 = arith.addf %3, %4 : vector<8x64xf32>
    %6 = arith.mulf %5, %5 : vector<8x64xf32>
    %cst_5 = arith.constant dense<0.000000e+00> : vector<8xf32>
    %7 = vector.multi_reduction <add>, %6, %cst_5 [1] : vector<8x64xf32> to vector<8xf32>
    %8 = vector.shape_cast %7 : vector<8xf32> to vector<8x1xf32>
    %9 = math.sqrt %8 : vector<8x1xf32>
    %cst_6 = arith.constant 9.99999997E-7 : f32
    %10 = vector.broadcast %cst_6 : f32 to vector<8x1xf32>
    %11 = arith.addf %10, %9 : vector<8x1xf32>
    %12 = tpu.reciprocal %11 : vector<8x1xf32> -> vector<8x1xf32>
    %c0_7 = arith.constant 0 : index
    %c0_8 = arith.constant 0 : index
    %13 = vector.load %arg4[%c0_7, %c0_8] : memref<8x64xf32, #tpu.memory_space<vmem>>, vector<8x64xf32>
    tpu.vector_store %arg4[%c0_7, %c0_8], %5 {strides = array<i32>} : memref<8x64xf32, #tpu.memory_space<vmem>>, vector<8x64xf32>,
    %14 = vector.broadcast %12 : vector<8x1xf32> to vector<8x64xf32>
    %15 = arith.mulf %5, %14 : vector<8x64xf32>
    %c0_9 = arith.constant 0 : index
    %c0_10 = arith.constant 0 : index
    %16 = vector.load %arg5[%c0_9, %c0_10] : memref<8x64xf32, #tpu.memory_space<vmem>>, vector<8x64xf32>
    tpu.vector_store %arg5[%c0_9, %c0_10], %15 {strides = array<i32>} : memref<8x64xf32, #tpu.memory_space<vmem>>, vector<8x64xf32>,
    return
  }
  func.func @transform_0(%arg0: i32) -> (i32, i32) {
    %c0_i32 = arith.constant 0 : i32
    %c0_i32_0 = arith.constant 0 : i32
    return %arg0, %c0_i32 : i32, i32
  }
  func.func @transform_1(%arg0: i32) -> (i32, i32) {
    %c0_i32 = arith.constant 0 : i32
    %c0_i32_0 = arith.constant 0 : i32
    %c0_i32_1 = arith.constant 0 : i32
    return %c0_i32, %c0_i32_0 : i32, i32
  }
  func.func @transform_2(%arg0: i32) -> (i32, i32) {
    %c0_i32 = arith.constant 0 : i32
    %c0_i32_0 = arith.constant 0 : i32
    %c0_i32_1 = arith.constant 0 : i32
    return %c0_i32, %c0_i32_0 : i32, i32
  }
  func.func @transform_3(%arg0: i32) -> (i32, i32) {
    %c0_i32 = arith.constant 0 : i32
    %c0_i32_0 = arith.constant 0 : i32
    return %arg0, %c0_i32 : i32, i32
  }
  func.func @transform_4(%arg0: i32) -> (i32, i32) {
    %c0_i32 = arith.constant 0 : i32
    %c0_i32_0 = arith.constant 0 : i32
    return %arg0, %c0_i32 : i32, i32
  }
}

module attributes {stable_mosaic.version = 11 : i64} {
  func.func @encoder_kernel(%arg0: i32, %arg1: memref<8x32xf32, #tpu.memory_space<vmem>>, %arg2: memref<32x64xf32, #tpu.memory_space<vmem>>, %arg3: memref<1x64xf32, #tpu.memory_space<vmem>>, %arg4: memref<8x64xf32, #tpu.memory_space<vmem>>, %arg5: memref<8x64xf32, #tpu.memory_space<vmem>>) attributes {dimension_semantics = [#tpu.dimension_semantics<parallel>], iteration_bounds = array<i64: 3>, scalar_prefetch = 0 : i64, scratch_operands = 0 : i64, tpu.core_type = #tpu.core_type<tc>, window_params = [{transform_indices = @transform_0, window_bounds = array<i64: 8, 32>}, {pipeline_mode = #tpu.pipeline_mode<synchronous>, transform_indices = @transform_1, window_bounds = array<i64: 32, 64>}, {pipeline_mode = #tpu.pipeline_mode<synchronous>, transform_indices = @transform_2, window_bounds = array<i64: 1, 64>}, {transform_indices = @transform_3, window_bounds = array<i64: 8, 64>}, {transform_indices = @transform_4, window_bounds = array<i64: 8, 64>}]} {
    %c0 = arith.constant 0 : index
    %c0_0 = arith.constant 0 : index
    %0 = vector.load %arg1[%c0, %c0_0] : memref<8x32xf32, #tpu.memory_space<vmem>>, vector<8x32xf32>
    %c0_1 = arith.constant 0 : index
    %c0_2 = arith.constant 0 : index
    %1 = vector.load %arg2[%c0_1, %c0_2] : memref<32x64xf32, #tpu.memory_space<vmem>>, vector<32x64xf32>
    %c0_3 = arith.constant 0 : index
    %c0_4 = arith.constant 0 : index
    %2 = vector.load %arg3[%c0_3, %c0_4] : memref<1x64xf32, #tpu.memory_space<vmem>>, vector<1x64xf32>
    %cst = arith.constant dense<0.000000e+00> : vector<8x64xf32>
    %3 = tpu.matmul %0, %1, %cst {dimension_numbers = #tpu.dot_dimension_numbers<[1], [0], [0], [1], [0, 0, 1, 1], [], []>} : vector<8x32xf32>, vector<32x64xf32>, vector<8x64xf32> -> vector<8x64xf32>
    %4 = vector.broadcast %2 : vector<1x64xf32> to vector<8x64xf32>
    %5 = arith.addf %3, %4 : vector<8x64xf32>
    %6 = arith.mulf %5, %5 : vector<8x64xf32>
    %cst_5 = arith.constant dense<0.000000e+00> : vector<8xf32>
    %7 = vector.multi_reduction <add>, %6, %cst_5 [1] : vector<8x64xf32> to vector<8xf32>
    %8 = vector.shape_cast %7 : vector<8xf32> to vector<8x1xf32>
    %9 = math.sqrt %8 : vector<8x1xf32>
    %cst_6 = arith.constant 9.99999997E-7 : f32
    %10 = vector.broadcast %cst_6 : f32 to vector<8x1xf32>
    %11 = arith.addf %10, %9 : vector<8x1xf32>
    %12 = tpu.reciprocal %11 : vector<8x1xf32> -> vector<8x1xf32>
    %c0_7 = arith.constant 0 : index
    %c0_8 = arith.constant 0 : index
    %13 = vector.load %arg4[%c0_7, %c0_8] : memref<8x64xf32, #tpu.memory_space<vmem>>, vector<8x64xf32>
    tpu.vector_store %arg4[%c0_7, %c0_8], %5 {strides = array<i32>} : memref<8x64xf32, #tpu.memory_space<vmem>>, vector<8x64xf32>,
    %14 = vector.broadcast %12 : vector<8x1xf32> to vector<8x64xf32>
    %15 = arith.mulf %5, %14 : vector<8x64xf32>
    %c0_9 = arith.constant 0 : index
    %c0_10 = arith.constant 0 : index
    %16 = vector.load %arg5[%c0_9, %c0_10] : memref<8x64xf32, #tpu.memory_space<vmem>>, vector<8x64xf32>
    tpu.vector_store %arg5[%c0_9, %c0_10], %15 {strides = array<i32>} : memref<8x64xf32, #tpu.memory_space<vmem>>, vector<8x64xf32>,
    return
  }
  func.func @transform_0(%arg0: i32) -> (i32, i32) {
    %c0_i32 = arith.constant 0 : i32
    %c0_i32_0 = arith.constant 0 : i32
    return %arg0, %c0_i32 : i32, i32
  }
  func.func @transform_1(%arg0: i32) -> (i32, i32) {
    %c0_i32 = arith.constant 0 : i32
    %c0_i32_0 = arith.constant 0 : i32
    %c0_i32_1 = arith.constant 0 : i32
    return %c0_i32, %c0_i32_0 : i32, i32
  }
  func.func @transform_2(%arg0: i32) -> (i32, i32) {
    %c0_i32 = arith.constant 0 : i32
    %c0_i32_0 = arith.constant 0 : i32
    %c0_i32_1 = arith.constant 0 : i32
    return %c0_i32, %c0_i32_0 : i32, i32
  }
  func.func @transform_3(%arg0: i32) -> (i32, i32) {
    %c0_i32 = arith.constant 0 : i32
    %c0_i32_0 = arith.constant 0 : i32
    return %arg0, %c0_i32 : i32, i32
  }
  func.func @transform_4(%arg0: i32) -> (i32, i32) {
    %c0_i32 = arith.constant 0 : i32
    %c0_i32_0 = arith.constant 0 : i32
    return %arg0, %c0_i32 : i32, i32
  }
}

</mosaic_0001>

<bundles_post_ra>
// kernel: tpu_custom_call.1
= control target key start
LH: loop header
LB: loop body
LE: loop exit
PB: predicated region body
PF: predicated region fallthrough
CT: control target
= control target key end

     0   :  { %10 = vsyncpa [#allocation3], 0  ;;  %s1019_s0 = inlined_call_operand.hbm [shape: f32[20,32], index: 0, kind: input, shape index: {}]   ;;  %s1020_s1 = inlined_call_operand.hbm [shape: f32[32,64], index: 1, kind: input, shape index: {}]   ;;  %s1021_s2 = inlined_call_operand.vmem [shape: f32[1,64], index: 2, kind: input, shape index: {}]   ;;  %s1022_s3 = inlined_call_operand.hbm [shape: f32[20,64], index: 3, kind: output, shape index: {0}]   ;;  %s1023_s4 = inlined_call_operand.hbm [shape: f32[20,64], index: 4, kind: output, shape index: {1}]  }
   0x1   :  { %12 = vsyncpa [#allocation3 + $0x1], 0 }
   0x2   :  { %13 = vsyncpa [#allocation6], 0 }
   0x3   :  { %14 = vsyncpa [#allocation4], 0 }
   0x4   :  { %16 = vsyncpa [#allocation4 + $0x1], 0 }
   0x5   :  { %17 = vsyncpa [#allocation9], 0 }
   0x6   :  { %19 = vsyncpa [#allocation9 + $0x1], 0  ;;  %s794_s15 = smov 0   ;;  %s796_s16 = smov 0  }
   0x7   :  { %s798_s17 = smov 0   ;;  %s800_s18 = smov 0  }
   0x8 LB: > { %s815_s19 = sadd.s32 4294967295, %s758_s18   ;;  %s486_s20 = sadd.s32 4294967294, %s758_s18   ;;  %s758_s18 = sphi %s800_s18, %s1042_s18   ;;  %s754_s17 = sphi %s798_s17, %s1041_s17   ;;  %s750_s16 = sphi %s796_s16, %s1040_s16   ;;  %s746_s15 = sphi %s794_s15, %s1039_s15  }
   0x9   : > { %p45_p0 = scmp.ne.s32.totalorder %s750_s16, %s746_s15  ;;  %p1024_p1 = scmp.eq.s32.totalorder %s815_s19, 0 }
   0xa   : > { %p117_p3 = scmp.eq.s32.totalorder %s486_s20, 2  ;;  %p487_p5 = scmp.ge.s32.totalorder %s758_s18, 1 }
   0xb   : > { %p824_p4 = por %p1024_p1, %p45_p0  ;;  %p150_p7 = scmp.lt.s32.totalorder %s758_s18, 4 }
   0xc   : > { %p829_p6 = por %p117_p3, %p45_p0  ;;  %s760_s24 = smov [#allocation5]  }
   0xd   : > { %s1027_s21 = scalar_select %p824_p4, 1, 0 }
   0xe   : > { %s1028_s22 = scalar_select %p829_p6, 1, 0 }
   0xf   : > { %p834_p8 = pnand %p487_p5, %p150_p7  ;;  %s162_s25 = sshll.u32 %s760_s24, 4  ;;  %s163_s25 = int_to_ptr.vmem [resolvable:$true] %s162_s25 }
  0x10   : > { %s847_s27 = sadd.s32 1, %s758_s18   ;;  %s32_s28 = sadd.s32 1, %s754_s17 }
  0x11   : > { %s1029_s23 = scalar_select %p834_p8, 1, 0 }
  0x12   : > { %p537_p9 = pneg %p834_p8  ;;  %s29_s29 = ssub.s32 %s758_s18, %s847_s27 }
  0x13   : > { %s598_s6 = scalar_lea.hbm %s1020_s1, 512 }
  0x14   : > { %p842_p10 = pnand %p537_p9, %p1024_p1  ;;  %p599_p11 = scmp.ne.s32.totalorder %s1020_s1, %s598_s6 }
  0x15   : > { %p605_p3 = scmp.lt.u32.totalorder %s598_s6, %s1020_s1 }
  0x16   : > { %p600_p12 = pneg %p842_p10 }
  0x18   : > { %p601_p13 = pnand %p600_p12, %p599_p11 }
  0x1a   : > { %p602_p0 = pneg %p601_p13 }
  0x1c   : > { %p607_p5 = pnand %p605_p3, %p602_p0 }
  0x1e   : > { %610 = shalt.err (!%p607_p5)
}
  0x1f   : > { %s611_s11 = scalar_lea.vmem %s163_s25, 512  ;;  %p619_p2 = scmp.lt.s32.totalorder %s163_s25, %s163_s25 }
  0x20   : > { %p612_p7 = scmp.ne.s32.totalorder %s163_s25, %s611_s11  ;;  %p620_p6 = scmp.lt.s32.totalorder %s611_s11, %s611_s11 }
  0x22   : > { %p614_p9 = pnand %p612_p7, %p600_p12  ;;  %p621_p4 = por %p620_p6, %p619_p2 }
  0x24   : > { %p615_p1 = pneg %p614_p9 }
  0x26   : > { %p622_p8 = pnand %p621_p4, %p615_p1 }
  0x28   : > { %625 = shalt.err (!%p622_p8)
}
  0x29   : > { %s761_s12 = smov 128   ;;  %s762_s13 = smov 8  }
  0x2a   : > { %540 = dma.hbm_to_vmem [thread:$0]  (!%p842_p10), %s1020_s1, 512, %s163_s25, [#allocation6], %s761_s12, %s761_s12, %s762_s13  }
  0x2b   : > { %p30_p11 = scmp.eq.s32.totalorder %s29_s29, 0  ;;  %p39_p2 = scmp.ne.s32.totalorder %s754_s17, %s750_s16 }
  0x2c   : > { %p40_p1 = scmp.eq.s32.totalorder %s758_s18, 0  ;;  %p553_p4 = scmp.lt.s32.totalorder %s758_s18, 3 }
  0x2d   : > { %s873_s24 = scalar_select %p30_p11, %s754_s17, %s32_s28  }
  0x2e   : > { %p41_p6 = por %p40_p1, %p39_p2  ;;  %p1031_p8 = scmp.eq.s32.totalorder %s815_s19, 2 }
  0x2f   : > { %s179_s5 = sand.u32 1, %s754_s17   ;;  %s491_s6 = sshll.u32 %s758_s18, 7 }
  0x30   : > { %p877_p12 = por %p1031_p8, %p39_p2  ;;  %s490_s7 = sshll.u32 %s179_s5, 3 }
  0x31   : > { %s886_s9 = scalar_lea.hbm %s1019_s0, %s491_s6  ;;  %s183_s25 = scalar_lea.vmem [#allocation2], %s490_s7 }
  0x32   : > { %s190_s28 = sshll.u32 %s183_s25, 4  ;;  %p888_p10 = pnand %p553_p4, %p41_p6  ;;  %s892_s28 = int_to_ptr.vmem [resolvable:$true] %s190_s28 }
  0x33   : > { %s180_s10 = scalar_lea.sflag [#allocation3], %s179_s5  ;;  %s626_s11 = scalar_lea.hbm %s886_s9, 128 }
  0x34   : > { %p627_p13 = scmp.ne.s32.totalorder %s886_s9, %s626_s11  ;;  %p628_p0 = pneg %p888_p10 }
  0x35   : > { %s631_s14 = scalar_lea.hbm %s1019_s0, 384  ;;  %p632_p7 = scmp.lt.u32.totalorder %s886_s9, %s1019_s0 }
  0x36   : > { %p629_p3 = pnand %p628_p0, %p627_p13  ;;  %p633_p9 = scmp.lt.u32.totalorder %s631_s14, %s626_s11 }
  0x37   : > { %p635_p2 = scmp.lt.u32.totalorder %s626_s11, %s886_s9 }
  0x38   : > { %p630_p5 = pneg %p629_p3  ;;  %p634_p11 = por %p633_p9, %p632_p7 }
  0x3a   : > { %p636_p1 = por %p635_p2, %p634_p11 }
  0x3c   : > { %p637_p4 = pnand %p636_p1, %p630_p5 }
  0x3e   : > { %640 = shalt.err (!%p637_p4)
}
  0x3f   : > { %s641_s5 = scalar_lea.vmem %s892_s28, 128  ;;  %s763_s7 = smov [#allocation2]  }
  0x40   : > { %p642_p6 = scmp.ne.s32.totalorder %s892_s28, %s641_s5  ;;  %s646_s26 = sshll.u32 %s763_s7, 4  ;;  %s647_s26 = int_to_ptr.vmem [resolvable:$false] %s646_s26 }
  0x41   : > { %s648_s8 = scalar_lea.vmem %s647_s26, 256  ;;  %p649_p3 = scmp.lt.s32.totalorder %s892_s28, %s647_s26 }
  0x42   : > { %p644_p8 = pnand %p642_p6, %p628_p0  ;;  %p650_p7 = scmp.lt.s32.totalorder %s648_s8, %s641_s5 }
  0x44   : > { %p645_p13 = pneg %p644_p8  ;;  %p651_p9 = por %p650_p7, %p649_p3 }
  0x46   : > { %p652_p11 = pnand %p651_p9, %p645_p13 }
  0x48   : > { %655 = shalt.err (!%p652_p11)
}
  0x49   : > { %544 = dma.hbm_to_vmem [thread:$0]  (!%p888_p10), %s886_s9, 128, %s892_s28, %s180_s10  }
  0x4a   : > { %p1034_p5 = scmp.ne.s32.totalorder %s1029_s23, 0 }
  0x4b   : > { %s922_s25 = sand.u32 (!%p1034_p5), 1, %s750_s16   ;;  %p1035_p0 = scmp.ne.s32.totalorder (!%p1034_p5), %s1027_s21, 0 }
  0x4c   : > { %199 = sbr.rel (%p1034_p5) target bundleno = 500 (0x1f4), region = 32  ;;  %s925_s11 = sshll.u32 (!%p1034_p5), %s922_s25, 3 }
  0x4d   : > { %s202_s12 = scalar_lea.sflag (!%p1034_p5), [#allocation3], %s922_s25  ;;  %s205_s13 = scalar_lea.vmem (!%p1034_p5), [#allocation2], %s925_s11 }
  0x53   : > { %729 = dma.done.wait (%p1035_p0), %s202_s12, 128  }
  0x54   : > { %731 = vsyncadd (%p1035_p0), %s202_s12, 4294967168  ;;  %p1036_p10 = scmp.eq.s32.totalorder %s815_s19, 0 }
  0x56   : > { %733 = dma.done.wait (%p1036_p10), [#allocation6], 512   ;;  %p1037_p2 = pmov %p1036_p10 }
  0x57   : > { %v764_v0 = vmov 0.0|0.0   ;;  %vm765_vm0 = vmmov 0   ;;  %v766_v1 = vmov 0.0   ;;  %v240_v2 = vld [vmem:[#allocation5] sm:$0xff]  ;;  %v241_v3 = vld [vmem:[#allocation5 + $0x8] sm:$0xff]  ;;  %v242_v4 = vld [vmem:[#allocation5 + $0x10] sm:$0xff] }
  0x58   : > { %735 = vsyncadd (%p1037_p2), [#allocation6], 4294966784  ;;  %521 = vmatprep.subr.bf16.mxu0 %v764_v0  ;;  %518 = vmatprep.mubr.msk.f32.mxu0 %vm765_vm0, %v766_v1  ;;  %v522_v5 = vpack.c.bf16 %v241_v3, %v240_v2  ;;  %v243_v6 = vld [vmem:[#allocation5 + $0x18] sm:$0xff]  ;;  %vm251_vm1 = vcmask 261120   ;;  %v497_v9 = vld [vmem:[%s1021_s2] ss:$0 sm:$0xff] }
  0x59   : > { %v525_v7 = vpack.c.bf16 %v243_v6, %v242_v4  ;;  %v239_v8 = vld [vmem:[%s205_s13] sm:$0xff]  ;;  %vm326_vm2 = vcmask 523264   ;;  %s231_s9 = scalar_lea.vmem [#allocation7], %s925_s11  ;;  %s501_s28 = sshll.u32 %s815_s19, 7 }
  0x5a   : > { %523 = vmatpush3.bf16.msra.mxu0 %v522_v5  ;;  %s949_s14 = scalar_lea.hbm %s1022_s3, %s501_s28  ;;  %s361_s20 = sshll.u32 %s231_s9, 4  ;;  %s362_s20 = int_to_ptr.vmem [resolvable:$true] %s361_s20 }
  0x5b   : > { %524 = vmatprep.subr.bf16.mxu0 %v764_v0  ;;  %s343_s6 = scalar_lea.sflag [#allocation4], %s922_s25  ;;  %s656_s5 = scalar_lea.vmem %s362_s20, 128 }
  0x5c   : > { %p657_p1 = scmp.ne.s32.totalorder %s362_s20, %s656_s5  ;;  %s767_s7 = smov [#allocation7]  }
  0x5d   : > { %s660_s26 = sshll.u32 %s767_s7, 4  ;;  %s661_s26 = int_to_ptr.vmem [resolvable:$false] %s660_s26 }
  0x5e   : > { %526 = vmatpush3.bf16.msra.mxu0 %v525_v7  ;;  %p658_p4 = pnand %p657_p1, %p877_p12  ;;  %s662_s8 = scalar_lea.vmem %s661_s26, 256 }
  0x5f   : > { %p663_p8 = scmp.lt.s32.totalorder %s362_s20, %s661_s26  ;;  %p664_p13 = scmp.lt.s32.totalorder %s662_s8, %s656_s5 }
  0x60   : > { %p659_p6 = pneg %p658_p4 }
  0x61   : > { %519 = vmatmul.mubr.msk.f32.vlgmr.msra.gmra.mrb[0].mxu0 %vm251_vm1, %v239_v8  ;;  %p665_p3 = por %p664_p13, %p663_p8 }
  0x63   : > { %p666_p7 = pnand %p665_p3, %p659_p6 }
 0x134   : > { %v321_v10 = vpop.f32.mrb[0].mxu0 }
 0x135   : > { %v322_v11 = vadd.f32 %v497_v9, %v321_v10  ;;  %v520_v12 = vpop.f32.mrb[1].mxu0 }
 0x137   : > { %v325_v13 = vmul.f32 %v322_v11, %v322_v11  ;;  %339 = vst.msk [vmem:[%s231_s9] sm:$0xff] %vm326_vm2, %v322_v11 }
 0x139   : > { %v327_v14 = vsel %vm326_vm2, %v325_v13, 0.0 }
 0x13a   : > { %328 = vadd.xlane.f32.xlu0 %v327_v14 }
 0x13b   : > { %669 = shalt.err (!%p666_p7)
}
 0x13c   : > { %s670_s12 = scalar_lea.hbm %s949_s14, 128  ;;  %s674_s23 = scalar_lea.hbm %s1022_s3, 384 }
 0x13d   : > { %p671_p9 = scmp.ne.s32.totalorder %s949_s14, %s670_s12  ;;  %p675_p0 = scmp.lt.u32.totalorder %s949_s14, %s1022_s3 }
 0x13e   : > { %p676_p10 = scmp.lt.u32.totalorder %s674_s23, %s670_s12  ;;  %p678_p1 = scmp.lt.u32.totalorder %s670_s12, %s949_s14 }
 0x13f   : > { %p672_p11 = pnand %p671_p9, %p877_p12 }
 0x140   : > { %p677_p2 = por %p676_p10, %p675_p0 }
 0x141   : > { %p673_p5 = pneg %p672_p11 }
 0x142   : > { %p679_p4 = por %p678_p1, %p677_p2 }
 0x144   : > { %p680_p6 = pnand %p679_p4, %p673_p5 }
 0x146   : > { %683 = shalt.err (!%p680_p6)
}
 0x147   : > { %533 = dma.vmem_to_hbm [thread:$0]  (%p877_p12), %s362_s20, 128, %s949_s14, %s343_s6  }
 0x148   : > { %s238_s10 = scalar_lea.vmem [#allocation8], %s925_s11  ;;  %s975_s6 = scalar_lea.hbm %s1023_s4, %s501_s28 }
 0x149   : > { %s374_s5 = sshll.u32 %s238_s10, 4  ;;  %s348_s7 = scalar_lea.sflag [#allocation9], %s922_s25  ;;  %s977_s5 = int_to_ptr.vmem [resolvable:$true] %s374_s5 }
 0x14a   : > { %s684_s26 = scalar_lea.vmem %s977_s5, 128  ;;  %s768_s11 = smov [#allocation8]  }
 0x14b   : > { %p685_p8 = scmp.ne.s32.totalorder %s977_s5, %s684_s26  ;;  %s688_s19 = sshll.u32 %s768_s11, 4  ;;  %s689_s19 = int_to_ptr.vmem [resolvable:$false] %s688_s19 }
 0x14c   : > { %s690_s8 = scalar_lea.vmem %s689_s19, 256  ;;  %p691_p7 = scmp.lt.s32.totalorder %s977_s5, %s689_s19 }
 0x14d   : > { %p686_p13 = pnand %p685_p8, %p877_p12  ;;  %p692_p9 = scmp.lt.s32.totalorder %s690_s8, %s684_s26 }
 0x14f   : > { %p687_p3 = pneg %p686_p13  ;;  %p693_p11 = por %p692_p9, %p691_p7 }
 0x151   : > { %p694_p5 = pnand %p693_p11, %p687_p3 }
 0x1c7   : > { %v329_v15 = vpop.xlane.xlu0 %328 }
 0x1c8   : > { %594 = vrsqrt.f32 %v329_v15  ;;  %vm332_vm3 = vcmp.eq.f32.partialorder %v329_v15, inf  ;;  %v335_v18 = vand.u32 2147483648, %v329_v15  ;;  %vm334_vm4 = vcmp.eq.f32.partialorder %v329_v15, 0.0 }
 0x1d2   : > { %v595_v16 = vpop.eup %594 }
 0x1d3   : > { %v331_v17 = vmul.f32 %v595_v16, %v329_v15 }
 0x1d5   : > { %v333_v19 = vsel %vm332_vm3, %v329_v15, %v331_v17 }
 0x1d6   : > { %v336_v20 = vsel %vm334_vm4, %v335_v18, %v333_v19 }
 0x1d7   : > { %v337_v21 = vadd.f32 1e-06, %v336_v20 }
 0x1d9   : > { %596 = vrcp.f32 %v337_v21 }
 0x1e3   : > { %v597_v22 = vpop.eup %596 }
 0x1e4   : > { %v340_v23 = vmul.f32 %v597_v22, %v322_v11 }
 0x1e6   : > { %341 = vst.msk [vmem:[%s238_s10] sm:$0xff] %vm326_vm2, %v340_v23 }
 0x1e7   : > { %697 = shalt.err (!%p694_p5)
}
 0x1e8   : > { %s698_s25 = scalar_lea.hbm %s975_s6, 128  ;;  %s702_s13 = scalar_lea.hbm %s1023_s4, 384 }
 0x1e9   : > { %p699_p0 = scmp.ne.s32.totalorder %s975_s6, %s698_s25  ;;  %p703_p1 = scmp.lt.u32.totalorder %s975_s6, %s1023_s4 }
 0x1ea   : > { %p704_p4 = scmp.lt.u32.totalorder %s702_s13, %s698_s25  ;;  %p706_p8 = scmp.lt.u32.totalorder %s698_s25, %s975_s6 }
 0x1eb   : > { %p700_p10 = pnand %p699_p0, %p877_p12 }
 0x1ec   : > { %p705_p6 = por %p704_p4, %p703_p1 }
 0x1ed   : > { %p701_p2 = pneg %p700_p10 }
 0x1ee   : > { %p707_p13 = por %p706_p8, %p705_p6 }
 0x1f0   : > { %p708_p3 = pnand %p707_p13, %p701_p2 }
 0x1f2   : > { %711 = shalt.err (!%p708_p3)
}
 0x1f3   : > { %534 = dma.vmem_to_hbm [thread:$0]  (%p877_p12), %s977_s5, 128, %s975_s6, %s348_s7  }
 0x1f4 PF: > { %p555_p7 = scmp.ge.s32.totalorder %s758_s18, 2  ;;  %s386_s9 = sand.u32 1, %s746_s15  }
 0x1f5   : > { %p1038_p9 = scmp.ne.s32.totalorder %s1028_s22, 0  ;;  %s387_s29 = scalar_lea.sflag [#allocation4], %s386_s9 }
 0x1f7   : > { %p546_p11 = pnand %p555_p7, %p1038_p9 }
 0x1f9   : > { %737 = dma.done.wait (!%p546_p11), %s387_s29, 128  }
 0x1fa   : > { %739 = vsyncadd (!%p546_p11), %s387_s29, 4294967168  ;;  %s396_s10 = scalar_lea.sflag [#allocation9], %s386_s9 }
 0x1fb   : > { %741 = dma.done.wait (!%p546_p11), %s396_s10, 128  }
 0x1fc   : > { %743 = vsyncadd (!%p546_p11), %s396_s10, 4294967168  ;;  %p22_p12 = scmp.ge.s32.totalorder %s847_s27, 5   ;;  %s1039_s15 = smov %s750_s16 }
 0x1fd   : > { %s1040_s16 = smov %s754_s17  ;;  %s1041_s17 = smov %s873_s24 }
 0x1fe   : > { %s1042_s18 = smov %s847_s27  ;;  %24 = sbr.rel (!%p22_p12) target bundleno = 8 (0x8), region = 98 }
 0x205   :  { %401 = vsyncpa [#allocation3], 1 }
 0x206   :  { %403 = vsyncpa [#allocation3 + $0x1], 1 }
 0x207   :  { %404 = vsyncpa [#allocation6], 1 }
 0x208   :  { %405 = vsyncpa [#allocation4], 1 }
 0x209   :  { %407 = vsyncpa [#allocation4 + $0x1], 1 }
 0x20a   :  { %408 = vsyncpa [#allocation9], 1 }
 0x20b   :  { %410 = vsyncpa [#allocation9 + $0x1], 1 }

// kernel: tpu_custom_call.1
= control target key start
LH: loop header
LB: loop body
LE: loop exit
PB: predicated region body
PF: predicated region fallthrough
CT: control target
= control target key end

     0   :  { %10 = vsyncpa [#allocation3], 0  ;;  %s1019_s0 = inlined_call_operand.hbm [shape: f32[20,32], index: 0, kind: input, shape index: {}]   ;;  %s1020_s1 = inlined_call_operand.hbm [shape: f32[32,64], index: 1, kind: input, shape index: {}]   ;;  %s1021_s2 = inlined_call_operand.vmem [shape: f32[1,64], index: 2, kind: input, shape index: {}]   ;;  %s1022_s3 = inlined_call_operand.hbm [shape: f32[20,64], index: 3, kind: output, shape index: {0}]   ;;  %s1023_s4 = inlined_call_operand.hbm [shape: f32[20,64], index: 4, kind: output, shape index: {1}]  }
   0x1   :  { %12 = vsyncpa [#allocation3 + $0x1], 0 }
   0x2   :  { %13 = vsyncpa [#allocation6], 0 }
   0x3   :  { %14 = vsyncpa [#allocation4], 0 }
   0x4   :  { %16 = vsyncpa [#allocation4 + $0x1], 0 }
   0x5   :  { %17 = vsyncpa [#allocation9], 0 }
   0x6   :  { %19 = vsyncpa [#allocation9 + $0x1], 0  ;;  %s794_s15 = smov 0   ;;  %s796_s16 = smov 0  }
   0x7   :  { %s798_s17 = smov 0   ;;  %s800_s18 = smov 0  }
   0x8 LB: > { %s815_s19 = sadd.s32 4294967295, %s758_s18   ;;  %s486_s20 = sadd.s32 4294967294, %s758_s18   ;;  %s758_s18 = sphi %s800_s18, %s1042_s18   ;;  %s754_s17 = sphi %s798_s17, %s1041_s17   ;;  %s750_s16 = sphi %s796_s16, %s1040_s16   ;;  %s746_s15 = sphi %s794_s15, %s1039_s15  }
   0x9   : > { %p45_p0 = scmp.ne.s32.totalorder %s750_s16, %s746_s15  ;;  %p1024_p1 = scmp.eq.s32.totalorder %s815_s19, 0 }
   0xa   : > { %p117_p3 = scmp.eq.s32.totalorder %s486_s20, 2  ;;  %p487_p5 = scmp.ge.s32.totalorder %s758_s18, 1 }
   0xb   : > { %p824_p4 = por %p1024_p1, %p45_p0  ;;  %p150_p7 = scmp.lt.s32.totalorder %s758_s18, 4 }
   0xc   : > { %p829_p6 = por %p117_p3, %p45_p0  ;;  %s760_s24 = smov [#allocation5]  }
   0xd   : > { %s1027_s21 = scalar_select %p824_p4, 1, 0 }
   0xe   : > { %s1028_s22 = scalar_select %p829_p6, 1, 0 }
   0xf   : > { %p834_p8 = pnand %p487_p5, %p150_p7  ;;  %s162_s25 = sshll.u32 %s760_s24, 4  ;;  %s163_s25 = int_to_ptr.vmem [resolvable:$true] %s162_s25 }
  0x10   : > { %s847_s27 = sadd.s32 1, %s758_s18   ;;  %s32_s28 = sadd.s32 1, %s754_s17 }
  0x11   : > { %s1029_s23 = scalar_select %p834_p8, 1, 0 }
  0x12   : > { %p537_p9 = pneg %p834_p8  ;;  %s29_s29 = ssub.s32 %s758_s18, %s847_s27 }
  0x13   : > { %s598_s6 = scalar_lea.hbm %s1020_s1, 512 }
  0x14   : > { %p842_p10 = pnand %p537_p9, %p1024_p1  ;;  %p599_p11 = scmp.ne.s32.totalorder %s1020_s1, %s598_s6 }
  0x15   : > { %p605_p3 = scmp.lt.u32.totalorder %s598_s6, %s1020_s1 }
  0x16   : > { %p600_p12 = pneg %p842_p10 }
  0x18   : > { %p601_p13 = pnand %p600_p12, %p599_p11 }
  0x1a   : > { %p602_p0 = pneg %p601_p13 }
  0x1c   : > { %p607_p5 = pnand %p605_p3, %p602_p0 }
  0x1e   : > { %610 = shalt.err (!%p607_p5)
}
  0x1f   : > { %s611_s11 = scalar_lea.vmem %s163_s25, 512  ;;  %p619_p2 = scmp.lt.s32.totalorder %s163_s25, %s163_s25 }
  0x20   : > { %p612_p7 = scmp.ne.s32.totalorder %s163_s25, %s611_s11  ;;  %p620_p6 = scmp.lt.s32.totalorder %s611_s11, %s611_s11 }
  0x22   : > { %p614_p9 = pnand %p612_p7, %p600_p12  ;;  %p621_p4 = por %p620_p6, %p619_p2 }
  0x24   : > { %p615_p1 = pneg %p614_p9 }
  0x26   : > { %p622_p8 = pnand %p621_p4, %p615_p1 }
  0x28   : > { %625 = shalt.err (!%p622_p8)
}
  0x29   : > { %s761_s12 = smov 128   ;;  %s762_s13 = smov 8  }
  0x2a   : > { %540 = dma.hbm_to_vmem [thread:$0]  (!%p842_p10), %s1020_s1, 512, %s163_s25, [#allocation6], %s761_s12, %s761_s12, %s762_s13  }
  0x2b   : > { %p30_p11 = scmp.eq.s32.totalorder %s29_s29, 0  ;;  %p39_p2 = scmp.ne.s32.totalorder %s754_s17, %s750_s16 }
  0x2c   : > { %p40_p1 = scmp.eq.s32.totalorder %s758_s18, 0  ;;  %p553_p4 = scmp.lt.s32.totalorder %s758_s18, 3 }
  0x2d   : > { %s873_s24 = scalar_select %p30_p11, %s754_s17, %s32_s28  }
  0x2e   : > { %p41_p6 = por %p40_p1, %p39_p2  ;;  %p1031_p8 = scmp.eq.s32.totalorder %s815_s19, 2 }
  0x2f   : > { %s179_s5 = sand.u32 1, %s754_s17   ;;  %s491_s6 = sshll.u32 %s758_s18, 7 }
  0x30   : > { %p877_p12 = por %p1031_p8, %p39_p2  ;;  %s490_s7 = sshll.u32 %s179_s5, 3 }
  0x31   : > { %s886_s9 = scalar_lea.hbm %s1019_s0, %s491_s6  ;;  %s183_s25 = scalar_lea.vmem [#allocation2], %s490_s7 }
  0x32   : > { %s190_s28 = sshll.u32 %s183_s25, 4  ;;  %p888_p10 = pnand %p553_p4, %p41_p6  ;;  %s892_s28 = int_to_ptr.vmem [resolvable:$true] %s190_s28 }
  0x33   : > { %s180_s10 = scalar_lea.sflag [#allocation3], %s179_s5  ;;  %s626_s11 = scalar_lea.hbm %s886_s9, 128 }
  0x34   : > { %p627_p13 = scmp.ne.s32.totalorder %s886_s9, %s626_s11  ;;  %p628_p0 = pneg %p888_p10 }
  0x35   : > { %s631_s14 = scalar_lea.hbm %s1019_s0, 384  ;;  %p632_p7 = scmp.lt.u32.totalorder %s886_s9, %s1019_s0 }
  0x36   : > { %p629_p3 = pnand %p628_p0, %p627_p13  ;;  %p633_p9 = scmp.lt.u32.totalorder %s631_s14, %s626_s11 }
  0x37   : > { %p635_p2 = scmp.lt.u32.totalorder %s626_s11, %s886_s9 }
  0x38   : > { %p630_p5 = pneg %p629_p3  ;;  %p634_p11 = por %p633_p9, %p632_p7 }
  0x3a   : > { %p636_p1 = por %p635_p2, %p634_p11 }
  0x3c   : > { %p637_p4 = pnand %p636_p1, %p630_p5 }
  0x3e   : > { %640 = shalt.err (!%p637_p4)
}
  0x3f   : > { %s641_s5 = scalar_lea.vmem %s892_s28, 128  ;;  %s763_s7 = smov [#allocation2]  }
  0x40   : > { %p642_p6 = scmp.ne.s32.totalorder %s892_s28, %s641_s5  ;;  %s646_s26 = sshll.u32 %s763_s7, 4  ;;  %s647_s26 = int_to_ptr.vmem [resolvable:$false] %s646_s26 }
  0x41   : > { %s648_s8 = scalar_lea.vmem %s647_s26, 256  ;;  %p649_p3 = scmp.lt.s32.totalorder %s892_s28, %s647_s26 }
  0x42   : > { %p644_p8 = pnand %p642_p6, %p628_p0  ;;  %p650_p7 = scmp.lt.s32.totalorder %s648_s8, %s641_s5 }
  0x44   : > { %p645_p13 = pneg %p644_p8  ;;  %p651_p9 = por %p650_p7, %p649_p3 }
  0x46   : > { %p652_p11 = pnand %p651_p9, %p645_p13 }
  0x48   : > { %655 = shalt.err (!%p652_p11)
}
  0x49   : > { %544 = dma.hbm_to_vmem [thread:$0]  (!%p888_p10), %s886_s9, 128, %s892_s28, %s180_s10  }
  0x4a   : > { %p1034_p5 = scmp.ne.s32.totalorder %s1029_s23, 0 }
  0x4b   : > { %s922_s25 = sand.u32 (!%p1034_p5), 1, %s750_s16   ;;  %p1035_p0 = scmp.ne.s32.totalorder (!%p1034_p5), %s1027_s21, 0 }
  0x4c   : > { %199 = sbr.rel (%p1034_p5) target bundleno = 500 (0x1f4), region = 32  ;;  %s925_s11 = sshll.u32 (!%p1034_p5), %s922_s25, 3 }
  0x4d   : > { %s202_s12 = scalar_lea.sflag (!%p1034_p5), [#allocation3], %s922_s25  ;;  %s205_s13 = scalar_lea.vmem (!%p1034_p5), [#allocation2], %s925_s11 }
  0x53   : > { %729 = dma.done.wait (%p1035_p0), %s202_s12, 128  }
  0x54   : > { %731 = vsyncadd (%p1035_p0), %s202_s12, 4294967168  ;;  %p1036_p10 = scmp.eq.s32.totalorder %s815_s19, 0 }
  0x56   : > { %733 = dma.done.wait (%p1036_p10), [#allocation6], 512   ;;  %p1037_p2 = pmov %p1036_p10 }
  0x57   : > { %v764_v0 = vmov 0.0|0.0   ;;  %vm765_vm0 = vmmov 0   ;;  %v766_v1 = vmov 0.0   ;;  %v240_v2 = vld [vmem:[#allocation5] sm:$0xff]  ;;  %v241_v3 = vld [vmem:[#allocation5 + $0x8] sm:$0xff]  ;;  %v242_v4 = vld [vmem:[#allocation5 + $0x10] sm:$0xff] }
  0x58   : > { %735 = vsyncadd (%p1037_p2), [#allocation6], 4294966784  ;;  %521 = vmatprep.subr.bf16.mxu0 %v764_v0  ;;  %518 = vmatprep.mubr.msk.f32.mxu0 %vm765_vm0, %v766_v1  ;;  %v522_v5 = vpack.c.bf16 %v241_v3, %v240_v2  ;;  %v243_v6 = vld [vmem:[#allocation5 + $0x18] sm:$0xff]  ;;  %vm251_vm1 = vcmask 261120   ;;  %v497_v9 = vld [vmem:[%s1021_s2] ss:$0 sm:$0xff] }
  0x59   : > { %v525_v7 = vpack.c.bf16 %v243_v6, %v242_v4  ;;  %v239_v8 = vld [vmem:[%s205_s13] sm:$0xff]  ;;  %vm326_vm2 = vcmask 523264   ;;  %s231_s9 = scalar_lea.vmem [#allocation7], %s925_s11  ;;  %s501_s28 = sshll.u32 %s815_s19, 7 }
  0x5a   : > { %523 = vmatpush3.bf16.msra.mxu0 %v522_v5  ;;  %s949_s14 = scalar_lea.hbm %s1022_s3, %s501_s28  ;;  %s361_s20 = sshll.u32 %s231_s9, 4  ;;  %s362_s20 = int_to_ptr.vmem [resolvable:$true] %s361_s20 }
  0x5b   : > { %524 = vmatprep.subr.bf16.mxu0 %v764_v0  ;;  %s343_s6 = scalar_lea.sflag [#allocation4], %s922_s25  ;;  %s656_s5 = scalar_lea.vmem %s362_s20, 128 }
  0x5c   : > { %p657_p1 = scmp.ne.s32.totalorder %s362_s20, %s656_s5  ;;  %s767_s7 = smov [#allocation7]  }
  0x5d   : > { %s660_s26 = sshll.u32 %s767_s7, 4  ;;  %s661_s26 = int_to_ptr.vmem [resolvable:$false] %s660_s26 }
  0x5e   : > { %526 = vmatpush3.bf16.msra.mxu0 %v525_v7  ;;  %p658_p4 = pnand %p657_p1, %p877_p12  ;;  %s662_s8 = scalar_lea.vmem %s661_s26, 256 }
  0x5f   : > { %p663_p8 = scmp.lt.s32.totalorder %s362_s20, %s661_s26  ;;  %p664_p13 = scmp.lt.s32.totalorder %s662_s8, %s656_s5 }
  0x60   : > { %p659_p6 = pneg %p658_p4 }
  0x61   : > { %519 = vmatmul.mubr.msk.f32.vlgmr.msra.gmra.mrb[0].mxu0 %vm251_vm1, %v239_v8  ;;  %p665_p3 = por %p664_p13, %p663_p8 }
  0x63   : > { %p666_p7 = pnand %p665_p3, %p659_p6 }
 0x134   : > { %v321_v10 = vpop.f32.mrb[0].mxu0 }
 0x135   : > { %v322_v11 = vadd.f32 %v497_v9, %v321_v10  ;;  %v520_v12 = vpop.f32.mrb[1].mxu0 }
 0x137   : > { %v325_v13 = vmul.f32 %v322_v11, %v322_v11  ;;  %339 = vst.msk [vmem:[%s231_s9] sm:$0xff] %vm326_vm2, %v322_v11 }
 0x139   : > { %v327_v14 = vsel %vm326_vm2, %v325_v13, 0.0 }
 0x13a   : > { %328 = vadd.xlane.f32.xlu0 %v327_v14 }
 0x13b   : > { %669 = shalt.err (!%p666_p7)
}
 0x13c   : > { %s670_s12 = scalar_lea.hbm %s949_s14, 128  ;;  %s674_s23 = scalar_lea.hbm %s1022_s3, 384 }
 0x13d   : > { %p671_p9 = scmp.ne.s32.totalorder %s949_s14, %s670_s12  ;;  %p675_p0 = scmp.lt.u32.totalorder %s949_s14, %s1022_s3 }
 0x13e   : > { %p676_p10 = scmp.lt.u32.totalorder %s674_s23, %s670_s12  ;;  %p678_p1 = scmp.lt.u32.totalorder %s670_s12, %s949_s14 }
 0x13f   : > { %p672_p11 = pnand %p671_p9, %p877_p12 }
 0x140   : > { %p677_p2 = por %p676_p10, %p675_p0 }
 0x141   : > { %p673_p5 = pneg %p672_p11 }
 0x142   : > { %p679_p4 = por %p678_p1, %p677_p2 }
 0x144   : > { %p680_p6 = pnand %p679_p4, %p673_p5 }
 0x146   : > { %683 = shalt.err (!%p680_p6)
}
 0x147   : > { %533 = dma.vmem_to_hbm [thread:$0]  (%p877_p12), %s362_s20, 128, %s949_s14, %s343_s6  }
 0x148   : > { %s238_s10 = scalar_lea.vmem [#allocation8], %s925_s11  ;;  %s975_s6 = scalar_lea.hbm %s1023_s4, %s501_s28 }
 0x149   : > { %s374_s5 = sshll.u32 %s238_s10, 4  ;;  %s348_s7 = scalar_lea.sflag [#allocation9], %s922_s25  ;;  %s977_s5 = int_to_ptr.vmem [resolvable:$true] %s374_s5 }
 0x14a   : > { %s684_s26 = scalar_lea.vmem %s977_s5, 128  ;;  %s768_s11 = smov [#allocation8]  }
 0x14b   : > { %p685_p8 = scmp.ne.s32.totalorder %s977_s5, %s684_s26  ;;  %s688_s19 = sshll.u32 %s768_s11, 4  ;;  %s689_s19 = int_to_ptr.vmem [resolvable:$false] %s688_s19 }
 0x14c   : > { %s690_s8 = scalar_lea.vmem %s689_s19, 256  ;;  %p691_p7 = scmp.lt.s32.totalorder %s977_s5, %s689_s19 }
 0x14d   : > { %p686_p13 = pnand %p685_p8, %p877_p12  ;;  %p692_p9 = scmp.lt.s32.totalorder %s690_s8, %s684_s26 }
 0x14f   : > { %p687_p3 = pneg %p686_p13  ;;  %p693_p11 = por %p692_p9, %p691_p7 }
 0x151   : > { %p694_p5 = pnand %p693_p11, %p687_p3 }
 0x1c7   : > { %v329_v15 = vpop.xlane.xlu0 %328 }
 0x1c8   : > { %594 = vrsqrt.f32 %v329_v15  ;;  %vm332_vm3 = vcmp.eq.f32.partialorder %v329_v15, inf  ;;  %v335_v18 = vand.u32 2147483648, %v329_v15  ;;  %vm334_vm4 = vcmp.eq.f32.partialorder %v329_v15, 0.0 }
 0x1d2   : > { %v595_v16 = vpop.eup %594 }
 0x1d3   : > { %v331_v17 = vmul.f32 %v595_v16, %v329_v15 }
 0x1d5   : > { %v333_v19 = vsel %vm332_vm3, %v329_v15, %v331_v17 }
 0x1d6   : > { %v336_v20 = vsel %vm334_vm4, %v335_v18, %v333_v19 }
 0x1d7   : > { %v337_v21 = vadd.f32 1e-06, %v336_v20 }
 0x1d9   : > { %596 = vrcp.f32 %v337_v21 }
 0x1e3   : > { %v597_v22 = vpop.eup %596 }
 0x1e4   : > { %v340_v23 = vmul.f32 %v597_v22, %v322_v11 }
 0x1e6   : > { %341 = vst.msk [vmem:[%s238_s10] sm:$0xff] %vm326_vm2, %v340_v23 }
 0x1e7   : > { %697 = shalt.err (!%p694_p5)
}
 0x1e8   : > { %s698_s25 = scalar_lea.hbm %s975_s6, 128  ;;  %s702_s13 = scalar_lea.hbm %s1023_s4, 384 }
 0x1e9   : > { %p699_p0 = scmp.ne.s32.totalorder %s975_s6, %s698_s25  ;;  %p703_p1 = scmp.lt.u32.totalorder %s975_s6, %s1023_s4 }
 0x1ea   : > { %p704_p4 = scmp.lt.u32.totalorder %s702_s13, %s698_s25  ;;  %p706_p8 = scmp.lt.u32.totalorder %s698_s25, %s975_s6 }
 0x1eb   : > { %p700_p10 = pnand %p699_p0, %p877_p12 }
 0x1ec   : > { %p705_p6 = por %p704_p4, %p703_p1 }
 0x1ed   : > { %p701_p2 = pneg %p700_p10 }
 0x1ee   : > { %p707_p13 = por %p706_p8, %p705_p6 }
 0x1f0   : > { %p708_p3 = pnand %p707_p13, %p701_p2 }
 0x1f2   : > { %711 = shalt.err (!%p708_p3)
}
 0x1f3   : > { %534 = dma.vmem_to_hbm [thread:$0]  (%p877_p12), %s977_s5, 128, %s975_s6, %s348_s7  }
 0x1f4 PF: > { %p555_p7 = scmp.ge.s32.totalorder %s758_s18, 2  ;;  %s386_s9 = sand.u32 1, %s746_s15  }
 0x1f5   : > { %p1038_p9 = scmp.ne.s32.totalorder %s1028_s22, 0  ;;  %s387_s29 = scalar_lea.sflag [#allocation4], %s386_s9 }
 0x1f7   : > { %p546_p11 = pnand %p555_p7, %p1038_p9 }
 0x1f9   : > { %737 = dma.done.wait (!%p546_p11), %s387_s29, 128  }
 0x1fa   : > { %739 = vsyncadd (!%p546_p11), %s387_s29, 4294967168  ;;  %s396_s10 = scalar_lea.sflag [#allocation9], %s386_s9 }
 0x1fb   : > { %741 = dma.done.wait (!%p546_p11), %s396_s10, 128  }
 0x1fc   : > { %743 = vsyncadd (!%p546_p11), %s396_s10, 4294967168  ;;  %p22_p12 = scmp.ge.s32.totalorder %s847_s27, 5   ;;  %s1039_s15 = smov %s750_s16 }
 0x1fd   : > { %s1040_s16 = smov %s754_s17  ;;  %s1041_s17 = smov %s873_s24 }
 0x1fe   : > { %s1042_s18 = smov %s847_s27  ;;  %24 = sbr.rel (!%p22_p12) target bundleno = 8 (0x8), region = 98 }
 0x205   :  { %401 = vsyncpa [#allocation3], 1 }
 0x206   :  { %403 = vsyncpa [#allocation3 + $0x1], 1 }
 0x207   :  { %404 = vsyncpa [#allocation6], 1 }
 0x208   :  { %405 = vsyncpa [#allocation4], 1 }
 0x209   :  { %407 = vsyncpa [#allocation4 + $0x1], 1 }
 0x20a   :  { %408 = vsyncpa [#allocation9], 1 }
 0x20b   :  { %410 = vsyncpa [#allocation9 + $0x1], 1 }

</bundles_post_ra>
